<compile_context>
chip_gen: v6e
topology: v6e:2x2x1
jax: 0.10.0
libtpu: 0.0.40
codegen_flags: <defaults>
</compile_context>

<pallas_src>
import math
import jax
import jax.numpy as jnp
from jax.experimental import pallas as pl
from jax.experimental.pallas import tpu as pltpu


def _dense_classification_kernel(x_ref, w1_ref, b1_ref, w2_ref, b2_ref, o_ref):
    # x_ref : (TN, D)   w1_ref : (D, H)   b1_ref : (1, H)
    # w2_ref: (H, C)    b2_ref : (1, C)   o_ref  : (TN, C)
    x = x_ref[...]                      # native dtype (bf16 stays bf16 on MXU)

    # linear_1 + bias + ReLU (Dropout with p=0 / eval mode is identity)
    h1 = jnp.dot(x, w1_ref[...], preferred_element_type=jnp.float32)
    h1 = jnp.maximum(h1 + b1_ref[...].astype(jnp.float32), 0.0)
    # TODO(synk): training-mode Dropout (random mask) not implemented; eval-mode identity only.

    # output head: second matmul in the weights' native dtype, f32 accumulate
    z = jnp.dot(h1.astype(w2_ref.dtype), w2_ref[...],
                preferred_element_type=jnp.float32)
    z = z + b2_ref[...].astype(jnp.float32)

    # numerically stable LogSoftmax along the class axis (dim=1 in PyTorch)
    m = jnp.max(z, axis=-1, keepdims=True)
    lse = m + jnp.log(jnp.sum(jnp.exp(z - m), axis=-1, keepdims=True))
    o_ref[...] = (z - lse).astype(o_ref.dtype)


def _round_up(v, m):
    return ((v + m - 1) // m) * m


def dense_classification(h, w1, b1, w2, b2, *, block_n=4096):
    """h: [N, D]; w1: [D, H]; b1: [H]; w2: [H, C]; b2: [C].

    Weights are pre-transposed (in_features, out_features) vs. the PyTorch
    (out, in) layout so the kernel does plain row-major MXU matmuls.
    """
    N, D = h.shape
    H = w1.shape[1]
    C = w2.shape[1]
    out_dtype = h.dtype

    # Sublane alignment for the batch tile follows the input dtype packing
    # (f32 -> 8, bf16 -> 16, int8/fp8 -> 32).
    sub = max(8, 32 // jnp.dtype(h.dtype).itemsize)

    # Batch tile: large enough to amortize per-grid-step overhead, capped so
    # the grid has >= 4 blocks when N allows it (keeps both v7x TensorCores
    # busy via the "parallel" batch axis), never larger than the rounded batch.
    tn = min(block_n, _round_up(pl.cdiv(N, 4), sub))
    tn = max(sub, min(tn, _round_up(N, sub)))
    n_blocks = pl.cdiv(N, tn)           # ragged last block handled by Pallas

    b1_2d = b1.reshape(1, H)
    b2_2d = b2.reshape(1, C)

    out_itemsize = jnp.dtype(out_dtype).itemsize
    cost = pl.CostEstimate(
        flops=2 * N * (D * H + H * C),
        transcendentals=N * (C + 1),
        bytes_accessed=int(h.size * h.dtype.itemsize
                           + w1.size * w1.dtype.itemsize
                           + b1.size * b1.dtype.itemsize
                           + w2.size * w2.dtype.itemsize
                           + b2.size * b2.dtype.itemsize
                           + N * C * out_itemsize),
    )

    return pl.pallas_call(
        _dense_classification_kernel,
        out_shape=jax.ShapeDtypeStruct((N, C), out_dtype),
        grid_spec=pl.GridSpec(
            grid=(n_blocks,),
            in_specs=[
                pl.BlockSpec((tn, D), lambda i: (i, 0)),   # x: batch-tiled
                pl.BlockSpec((D, H), lambda i: (0, 0)),    # W1: VMEM-resident
                pl.BlockSpec((1, H), lambda i: (0, 0)),    # b1: VMEM-resident
                pl.BlockSpec((H, C), lambda i: (0, 0)),    # W2: VMEM-resident
                pl.BlockSpec((1, C), lambda i: (0, 0)),    # b2: VMEM-resident
            ],
            out_specs=pl.BlockSpec((tn, C), lambda i: (i, 0)),  # real C only
        ),
        compiler_params=pltpu.CompilerParams(
            dimension_semantics=("parallel",)),   # 2-TC sharding on v7x
        cost_estimate=cost,
    )(h, w1, b1_2d, w2, b2_2d)


# ---------------------------- init helpers (PyTorch-matching) ----------------
def _xavier_uniform(key, fan_out, fan_in, dtype=jnp.float32):
    # matches torch.nn.init.xavier_uniform_ on a (fan_out, fan_in) weight
    a = math.sqrt(6.0 / (fan_in + fan_out))
    return jax.random.uniform(key, (fan_out, fan_in), dtype, minval=-a, maxval=a)


def _linear_bias(key, fan_in, fan_out, dtype=jnp.float32):
    # torch.nn.Linear default bias init: U(-1/sqrt(fan_in), 1/sqrt(fan_in))
    bound = 1.0 / math.sqrt(fan_in)
    return jax.random.uniform(key, (fan_out,), dtype, minval=-bound, maxval=bound)


def _reference(h, w1, b1, w2, b2):
    h1 = jnp.maximum(h.astype(jnp.float32) @ w1.astype(jnp.float32)
                     + b1.astype(jnp.float32), 0.0)
    z = h1 @ w2.astype(jnp.float32) + b2.astype(jnp.float32)
    return jax.nn.log_softmax(z, axis=-1)


if __name__ == "__main__":
    # hparams: embedding_dim=32, nb_cls_dense_size=64, n_classes=16,
    #          nb_cls_dropout=0.0, loss_type='NEGATIVE_LOG_LIKELIHOOD'
    D, H, C = 32, 64, 16

    key = jax.random.PRNGKey(0)
    k_x, k_w1, k_b1, k_w2, k_b2, k_x2 = jax.random.split(key, 6)

    # PyTorch Linear stores weight as (out, in); pre-transpose to (in, out).
    w1 = _xavier_uniform(k_w1, H, D).T            # (D, H)
    w2 = _xavier_uniform(k_w2, C, H).T            # (H, C)
    b1 = _linear_bias(k_b1, D, H)                 # (H,)
    b2 = _linear_bias(k_b2, H, C)                 # (C,)

    # ---- small f32 check (grid of 1) ----------------------------------------
    N = 8
    h = jax.random.normal(k_x, (N, D), jnp.float32)
    out = jax.block_until_ready(dense_classification(h, w1, b1, w2, b2))
    ref = _reference(h, w1, b1, w2, b2)
    assert out.shape == (N, C)
    assert jnp.allclose(out, ref, atol=1e-5, rtol=1e-5), "f32 small mismatch"

    # ---- larger f32 check: batch tiling + ragged last block -----------------
    N2 = 1030                                      # not a multiple of the tile
    h2 = jax.random.normal(k_x2, (N2, D), jnp.float32)
    out2 = jax.block_until_ready(dense_classification(h2, w1, b1, w2, b2))
    ref2 = _reference(h2, w1, b1, w2, b2)
    assert out2.shape == (N2, C)
    assert jnp.allclose(out2, ref2, atol=1e-4, rtol=1e-4), "f32 tiled mismatch"

    # ---- bf16 path: operands fed to the MXU without f32 upcast --------------
    hb = h2.astype(jnp.bfloat16)
    out_bf16 = jax.block_until_ready(
        dense_classification(hb, w1.astype(jnp.bfloat16), b1.astype(jnp.bfloat16),
                             w2.astype(jnp.bfloat16), b2.astype(jnp.bfloat16)))
    ref_bf16 = _reference(hb, w1.astype(jnp.bfloat16), b1.astype(jnp.bfloat16),
                          w2.astype(jnp.bfloat16), b2.astype(jnp.bfloat16))
    max_err = float(jnp.max(jnp.abs(out_bf16.astype(jnp.float32) - ref_bf16)))
    assert out_bf16.dtype == jnp.bfloat16 and out_bf16.shape == (N2, C)
    assert max_err < 0.1, "bf16 mismatch"

    print("KERNEL_OK")
</pallas_src>

<mosaic_0001>
module attributes {stable_mosaic.version = 11 : i64} {
  func.func @_dense_classification_kernel(%arg0: i32, %arg1: memref<8x32xf32, #tpu.memory_space<vmem>>, %arg2: memref<32x64xf32, #tpu.memory_space<vmem>>, %arg3: memref<1x64xf32, #tpu.memory_space<vmem>>, %arg4: memref<64x16xf32, #tpu.memory_space<vmem>>, %arg5: memref<1x16xf32, #tpu.memory_space<vmem>>, %arg6: memref<8x16xf32, #tpu.memory_space<vmem>>) attributes {dimension_semantics = [#tpu.dimension_semantics<parallel>], iteration_bounds = array<i64: 1>, scalar_prefetch = 0 : i64, scratch_operands = 0 : i64, tpu.core_type = #tpu.core_type<tc>, window_params = [{transform_indices = @transform_0, window_bounds = array<i64: 8, 32>}, {pipeline_mode = #tpu.pipeline_mode<synchronous>, transform_indices = @transform_1, window_bounds = array<i64: 32, 64>}, {pipeline_mode = #tpu.pipeline_mode<synchronous>, transform_indices = @transform_2, window_bounds = array<i64: 1, 64>}, {pipeline_mode = #tpu.pipeline_mode<synchronous>, transform_indices = @transform_3, window_bounds = array<i64: 64, 16>}, {pipeline_mode = #tpu.pipeline_mode<synchronous>, transform_indices = @transform_4, window_bounds = array<i64: 1, 16>}, {transform_indices = @transform_5, window_bounds = array<i64: 8, 16>}]} {
    %c0 = arith.constant 0 : index
    %c0_0 = arith.constant 0 : index
    %0 = vector.load %arg1[%c0, %c0_0] : memref<8x32xf32, #tpu.memory_space<vmem>>, vector<8x32xf32>
    %c0_1 = arith.constant 0 : index
    %c0_2 = arith.constant 0 : index
    %1 = vector.load %arg2[%c0_1, %c0_2] : memref<32x64xf32, #tpu.memory_space<vmem>>, vector<32x64xf32>
    %cst = arith.constant dense<0.000000e+00> : vector<8x64xf32>
    %2 = tpu.matmul %0, %1, %cst {dimension_numbers = #tpu.dot_dimension_numbers<[1], [0], [0], [1], [0, 0, 1, 1], [], []>} : vector<8x32xf32>, vector<32x64xf32>, vector<8x64xf32> -> vector<8x64xf32>
    %c0_3 = arith.constant 0 : index
    %c0_4 = arith.constant 0 : index
    %3 = vector.load %arg3[%c0_3, %c0_4] : memref<1x64xf32, #tpu.memory_space<vmem>>, vector<1x64xf32>
    %4 = vector.broadcast %3 : vector<1x64xf32> to vector<8x64xf32>
    %5 = arith.addf %2, %4 : vector<8x64xf32>
    %cst_5 = arith.constant 0.000000e+00 : f32
    %6 = vector.broadcast %cst_5 : f32 to vector<8x64xf32>
    %7 = arith.maximumf %5, %6 : vector<8x64xf32>
    %c0_6 = arith.constant 0 : index
    %c0_7 = arith.constant 0 : index
    %8 = vector.load %arg4[%c0_6, %c0_7] : memref<64x16xf32, #tpu.memory_space<vmem>>, vector<64x16xf32>
    %cst_8 = arith.constant dense<0.000000e+00> : vector<8x16xf32>
    %9 = tpu.matmul %7, %8, %cst_8 {dimension_numbers = #tpu.dot_dimension_numbers<[1], [0], [0], [1], [0, 0, 1, 1], [], []>} : vector<8x64xf32>, vector<64x16xf32>, vector<8x16xf32> -> vector<8x16xf32>
    %c0_9 = arith.constant 0 : index
    %c0_10 = arith.constant 0 : index
    %10 = vector.load %arg5[%c0_9, %c0_10] : memref<1x16xf32, #tpu.memory_space<vmem>>, vector<1x16xf32>
    %11 = vector.broadcast %10 : vector<1x16xf32> to vector<8x16xf32>
    %12 = arith.addf %9, %11 : vector<8x16xf32>
    %cst_11 = arith.constant dense<0xFF800000> : vector<8xf32>
    %13 = vector.multi_reduction <maximumf>, %12, %cst_11 [1] : vector<8x16xf32> to vector<8xf32>
    %14 = vector.shape_cast %13 : vector<8xf32> to vector<8x1xf32>
    %15 = vector.broadcast %14 : vector<8x1xf32> to vector<8x16xf32>
    %16 = arith.subf %12, %15 : vector<8x16xf32>
    %17 = math.exp %16 : vector<8x16xf32>
    %cst_12 = arith.constant dense<0.000000e+00> : vector<8xf32>
    %18 = vector.multi_reduction <add>, %17, %cst_12 [1] : vector<8x16xf32> to vector<8xf32>
    %19 = vector.shape_cast %18 : vector<8xf32> to vector<8x1xf32>
    %20 = math.log %19 : vector<8x1xf32>
    %21 = arith.addf %14, %20 : vector<8x1xf32>
    %22 = vector.broadcast %21 : vector<8x1xf32> to vector<8x16xf32>
    %23 = arith.subf %12, %22 : vector<8x16xf32>
    %c0_13 = arith.constant 0 : index
    %c0_14 = arith.constant 0 : index
    %24 = vector.load %arg6[%c0_13, %c0_14] : memref<8x16xf32, #tpu.memory_space<vmem>>, vector<8x16xf32>
    tpu.vector_store %arg6[%c0_13, %c0_14], %23 {strides = array<i32>} : memref<8x16xf32, #tpu.memory_space<vmem>>, vector<8x16xf32>,
    return
  }
  func.func @transform_0(%arg0: i32) -> (i32, i32) {
    %c0_i32 = arith.constant 0 : i32
    %c0_i32_0 = arith.constant 0 : i32
    return %arg0, %c0_i32 : i32, i32
  }
  func.func @transform_1(%arg0: i32) -> (i32, i32) {
    %c0_i32 = arith.constant 0 : i32
    %c0_i32_0 = arith.constant 0 : i32
    %c0_i32_1 = arith.constant 0 : i32
    return %c0_i32, %c0_i32_0 : i32, i32
  }
  func.func @transform_2(%arg0: i32) -> (i32, i32) {
    %c0_i32 = arith.constant 0 : i32
    %c0_i32_0 = arith.constant 0 : i32
    %c0_i32_1 = arith.constant 0 : i32
    return %c0_i32, %c0_i32_0 : i32, i32
  }
  func.func @transform_3(%arg0: i32) -> (i32, i32) {
    %c0_i32 = arith.constant 0 : i32
    %c0_i32_0 = arith.constant 0 : i32
    %c0_i32_1 = arith.constant 0 : i32
    return %c0_i32, %c0_i32_0 : i32, i32
  }
  func.func @transform_4(%arg0: i32) -> (i32, i32) {
    %c0_i32 = arith.constant 0 : i32
    %c0_i32_0 = arith.constant 0 : i32
    %c0_i32_1 = arith.constant 0 : i32
    return %c0_i32, %c0_i32_0 : i32, i32
  }
  func.func @transform_5(%arg0: i32) -> (i32, i32) {
    %c0_i32 = arith.constant 0 : i32
    %c0_i32_0 = arith.constant 0 : i32
    return %arg0, %c0_i32 : i32, i32
  }
}

</mosaic_0001>

<bundles_post_ra>
// kernel: tpu_custom_call.1
= control target key start
LH: loop header
LB: loop body
LE: loop exit
PB: predicated region body
PF: predicated region fallthrough
CT: control target
= control target key end

     0   :  { %v303_v1 = vmov 0.0   ;;  %vm304_vm0 = vmmov 0   ;;  %s389_s0 = inlined_call_operand.vmem [shape: f32[8,32], index: 0, kind: input, shape index: {}]   ;;  %s390_s1 = inlined_call_operand.vmem [shape: f32[32,64], index: 1, kind: input, shape index: {}]   ;;  %s391_s2 = inlined_call_operand.vmem [shape: f32[1,64], index: 2, kind: input, shape index: {}]   ;;  %s392_s3 = inlined_call_operand.vmem [shape: f32[64,16], index: 3, kind: input, shape index: {}]   ;;  %s393_s4 = inlined_call_operand.vmem [shape: f32[1,16], index: 4, kind: input, shape index: {}]   ;;  %s394_s5 = inlined_call_operand.hbm [shape: f32[8,16], index: 5, kind: output, shape index: {}]  }
   0x1   :  { %v25_v0 = vld [vmem:[%s390_s1 + $0x18] sm:$0xff]  ;;  %244 = vmatprep.subr.mxu0 %v303_v1  ;;  %v24_v2 = vld [vmem:[%s390_s1 + $0x10] sm:$0xff]  ;;  %252 = vmatprep.mubr.msk.f32.mxu0 %vm304_vm0, %v303_v1  ;;  %v23_v5 = vld [vmem:[%s390_s1 + $0x8] sm:$0xff] }
   0x2   :  { %v115_v3 = vld [vmem:[%s392_s3 + $0x38] sm:$0xff]  ;;  %245 = vmatpush3.msra.mxu0 %v25_v0  ;;  %255 = vmatprep.subr.mxu1 %v303_v1  ;;  %v114_v4 = vld [vmem:[%s392_s3 + $0x30] sm:$0xff] }
   0x3   :  { %246 = vmatprep.subr.mxu0 %v303_v1  ;;  %256 = vmatpush3.msra.mxu1 %v115_v3 }
   0x4   :  { %10 = vsyncpa [#allocation3], 0  ;;  %247 = vmatpush3.msra.mxu0 %v24_v2  ;;  %257 = vmatprep.subr.mxu1 %v303_v1  ;;  %v113_v6 = vld [vmem:[%s392_s3 + $0x28] sm:$0xff]  ;;  %v22_v7 = vld [vmem:[%s390_s1] sm:$0xff]  ;;  %vm33_vm1 = vcmask 261120   ;;  %vm123_vm2 = vcmask 523264  }
   0x5   :  { %248 = vmatprep.subr.mxu0 %v303_v1  ;;  %258 = vmatpush3.msra.mxu1 %v114_v4  ;;  %v21_v8 = vld [vmem:[%s389_s0] sm:$0xff]  ;;  %v111_v10 = vld [vmem:[%s392_s3 + $0x18] sm:$0xff]  ;;  %v110_v11 = vld [vmem:[%s392_s3 + $0x10] sm:$0xff]  ;;  %vm197_vm3 = vcmask 130048  }
   0x6   :  { %249 = vmatpush3.msra.mxu0 %v23_v5  ;;  %259 = vmatprep.subr.mxu1 %v303_v1  ;;  %v112_v9 = vld [vmem:[%s392_s3 + $0x20] sm:$0xff]  ;;  %v109_v12 = vld [vmem:[%s392_s3 + $0x8] sm:$0xff] }
   0x7   :  { %250 = vmatprep.subr.mxu0 %v303_v1  ;;  %260 = vmatpush3.msra.mxu1 %v113_v6  ;;  %v108_v13 = vld [vmem:[%s392_s3] sm:$0xff] }
   0x8   :  { %251 = vmatpush3.msra.mxu0 %v22_v7  ;;  %261 = vmatprep.subr.mxu1 %v303_v1  ;;  %v226_v14 = vld [vmem:[%s391_s2] ss:$0 sm:$0xff]  ;;  %s305_s2 = smov [#allocation2]  }
   0x9   :  { %253 = vmatmul.mubr.msk.f32.vlgmr.msra.gmra.mxu0 %vm33_vm1, %v21_v8  ;;  %262 = vmatpush3.msra.mxu1 %v112_v9  ;;  %v228_v19 = vld [vmem:[%s393_s4] ss:$0 sm:$0xff]  ;;  %s218_s3 = sshll.u32 %s305_s2, 4  ;;  %s219_s3 = int_to_ptr.vmem [resolvable:$true] %s218_s3 }
   0xa   :  { %263 = vmatprep.subr.mxu1 %v303_v1  ;;  %271 = vmatprep.mubr.msk.f32.mxu1 %vm304_vm0, %v303_v1  ;;  %s281_s4 = scalar_lea.vmem %s219_s3, 128  ;;  %p286_p1 = scmp.lt.s32.totalorder %s219_s3, %s219_s3 }
   0xb   :  { %264 = vmatpush3.msra.mxu1 %v111_v10  ;;  %p282_p0 = scmp.ne.s32.totalorder %s219_s3, %s281_s4  ;;  %p287_p2 = scmp.lt.s32.totalorder %s281_s4, %s281_s4 }
   0xc   :  { %265 = vmatprep.subr.mxu1 %v303_v1 }
   0xd   :  { %266 = vmatpush3.msra.mxu1 %v110_v11  ;;  %p288_p3 = por %p287_p2, %p286_p1 }
   0xe   :  { %267 = vmatprep.subr.mxu1 %v303_v1 }
   0xf   :  { %268 = vmatpush3.msra.mxu1 %v109_v12  ;;  %p289_p4 = pnand %p288_p3, %p282_p0 }
  0x10   :  { %269 = vmatprep.subr.mxu1 %v303_v1 }
  0x11   :  { %270 = vmatpush3.msra.mxu1 %v108_v13 }
  0xc9   :  { %v103_v15 = vpop.f32.mrf.mxu0 }
  0xca   :  { %v104_v16 = vadd.f32 %v226_v14, %v103_v15 }
  0xcb   :  { %v254_v17 = vpop.f32.mrf.mxu0 }
  0xcc   :  { %v107_v18 = vmax.f32 %v104_v16, 0.0 }
  0xce   :  { %272 = vmatmul.mubr.msk.f32.vlgmr.msra.gmra.mxu1 %vm123_vm2, %v107_v18 }
 0x18e   :  { %v193_v20 = vpop.f32.mrf.mxu1 }
 0x18f   :  { %v194_v21 = vadd.f32 %v228_v19, %v193_v20 }
 0x190   :  { %v273_v22 = vpop.f32.mrf.mxu1 }
 0x191   :  { %v198_v23 = vsel %vm197_vm3, %v194_v21, -inf }
 0x192   :  { %199 = vmax.xlane.f32.xlu0 %v198_v23 }
 0x21b   :  { %v200_v24 = vpop.xlane.xlu0 %199 }
 0x21c   :  { %v201_v25 = vsub.f32 %v194_v21, %v200_v24 }
 0x21e   :  { %v202_v26 = vmul.f32 1.442695, %v201_v25 }
 0x220   :  { %277 = vpow2.f32 %v202_v26 }
 0x22d   :  { %v278_v27 = vpop.eup %277 }
 0x22e   :  { %v204_v28 = vsel %vm197_vm3, %v278_v27, 0.0 }
 0x22f   :  { %205 = vadd.xlane.f32.xlu0 %v204_v28 }
 0x2b8   :  { %v206_v29 = vpop.xlane.xlu0 %205 }
 0x2b9   :  { %279 = vlog2.f32 %v206_v29 }
 0x2c6   :  { %v280_v30 = vpop.eup %279 }
 0x2c7   :  { %v208_v31 = vmul.f32 0.6931472, %v280_v30 }
 0x2c9   :  { %v209_v32 = vadd.f32 %v208_v31, %v200_v24 }
 0x2cb   :  { %v210_v33 = vsub.f32 %v194_v21, %v209_v32 }
 0x2cd   :  { %211 = vst.msk [vmem:[#allocation2] sm:$0xff] %vm197_vm3, %v210_v33 }
 0x2ce   :  { %292 = shalt.err (!%p289_p4)
}
 0x2cf   :  { %221 = dma.vmem_to_hbm [thread:$0]  %s219_s3, 128, %s394_s5, [#allocation3]  }
 0x2d0   :  { %301 = dma.done.wait [#allocation3], 128  }
 0x2d1   :  { %302 = vsyncadd [#allocation3], 4294967168 }
 0x2d2   :  { %225 = vsyncpa [#allocation3], 1 }

</bundles_post_ra>
